<compile_context>
chip_gen: v6e
topology: v6e:2x2x1
jax: 0.10.0
libtpu: 0.0.40
codegen_flags: <defaults>
</compile_context>

<pallas_src>
import functools

import jax
import jax.numpy as jnp
from jax.experimental import pallas as pl
from jax.experimental.pallas import tpu as pltpu

LANE = 128
SUBLANE = 8
MAX_TILE_ROWS = 1024  # 1024 x 128 x 4B = 512 KiB per input tile


def _ipow(x, p):
    """x ** p with small integer exponents as repeated multiplies (VPU only)."""
    pf = float(p)
    if pf == int(pf) and 1 <= int(pf) <= 4:
        y = x
        for _ in range(int(pf) - 1):
            y = y * x
        return y
    return jnp.power(x, pf)


def _hm_loss_kernel(pred_ref, gt_ref, out_ref, loss_acc, cnt_acc, *, alpha, beta, eps):
    i = pl.program_id(0)

    @pl.when(i == 0)
    def _init():
        loss_acc[...] = jnp.zeros_like(loss_acc)
        cnt_acc[...] = jnp.zeros_like(cnt_acc)

    pred = jnp.clip(pred_ref[...], eps, 1.0 - eps)
    gt = gt_ref[...]

    pos = gt == 1.0
    neg = gt < 1.0
    pos_f = pos.astype(jnp.float32)
    neg_f = neg.astype(jnp.float32)

    # Positives need log(pred), negatives need log(1 - pred); the masks are
    # mutually exclusive, so one EUP log per element suffices.  Padded
    # elements (gt = 2.0, pred = 0.5) fall into the "neg" branch of the
    # select with a finite log and a zero coefficient.
    log_x = jnp.log(jnp.where(pos, pred, 1.0 - pred))

    # Guard the (1 - gt) base with the neg mask so gt >= 1 (incl. padding)
    # contributes an exact 0 for any beta.
    neg_base = jnp.where(neg, 1.0 - gt, 0.0)
    coeff = jnp.where(
        pos,
        _ipow(1.0 - pred, alpha),
        neg_f * _ipow(neg_base, beta) * _ipow(pred, alpha),
    )
    loss_elem = -coeff * log_x  # = per-element (pos_loss + neg_loss)

    # Sublane-group accumulation: reshape groups 8 tile-aligned rows, and the
    # axis-0 sum is pure elementwise VPU adds into the (8, 128) accumulators.
    rows = pred_ref.shape[0]
    loss_acc[...] += loss_elem.reshape(rows // SUBLANE, SUBLANE, LANE).sum(axis=0)
    cnt_acc[...] += pos_f.reshape(rows // SUBLANE, SUBLANE, LANE).sum(axis=0)

    @pl.when(i == pl.num_programs(0) - 1)
    def _finalize():
        total = jnp.sum(loss_acc[...])
        num_pos = jnp.maximum(jnp.sum(cnt_acc[...]), 1.0)
        out_ref[...] = jnp.full((1, 1), total / num_pos, dtype=jnp.float32)


def hm_loss(pred, gt, *, alpha=2.0, beta=2.0, eps=1e-4):
    """HMLoss.forward: pred, gt are 0-1 tensors of identical shape; returns scalar."""
    pred_f = pred.reshape(-1).astype(jnp.float32)
    gt_f = gt.reshape(-1).astype(jnp.float32)
    n = pred_f.shape[0]

    # Lane-dense layout: (rows, 128), rows a multiple of 8 and of the tile size.
    rows = max(SUBLANE, -(-n // LANE))
    rows = ((rows + SUBLANE - 1) // SUBLANE) * SUBLANE
    tile_rows = min(MAX_TILE_ROWS, rows)
    rows = ((rows + tile_rows - 1) // tile_rows) * tile_rows
    total = rows * LANE

    # Neutral padding: pred=0.5 (finite log), gt=2.0 (pos & neg masks both 0).
    pred_p = jnp.pad(pred_f, (0, total - n), constant_values=0.5).reshape(rows, LANE)
    gt_p = jnp.pad(gt_f, (0, total - n), constant_values=2.0).reshape(rows, LANE)

    out = pl.pallas_call(
        functools.partial(_hm_loss_kernel, alpha=alpha, beta=beta, eps=eps),
        out_shape=jax.ShapeDtypeStruct((1, 1), jnp.float32),
        grid_spec=pltpu.PrefetchScalarGridSpec(
            num_scalar_prefetch=0,
            grid=(rows // tile_rows,),
            in_specs=[
                pl.BlockSpec((tile_rows, LANE), lambda i: (i, 0)),
                pl.BlockSpec((tile_rows, LANE), lambda i: (i, 0)),
            ],
            out_specs=pl.BlockSpec((1, 1), lambda i: (0, 0)),
            scratch_shapes=[
                pltpu.VMEM((SUBLANE, LANE), jnp.float32),  # running loss sum
                pltpu.VMEM((SUBLANE, LANE), jnp.float32),  # running pos count
            ],
        ),
        compiler_params=pltpu.CompilerParams(
            dimension_semantics=("arbitrary",)),  # running reduction -> not parallel
    )(pred_p, gt_p)
    return out[0, 0]


def hm_loss_ref(pred, gt, alpha=2.0, beta=2.0, eps=1e-4):
    """Pure-JAX reference mirroring the PyTorch module."""
    pred = jnp.clip(pred.astype(jnp.float32), eps, 1.0 - eps)
    gt = gt.astype(jnp.float32)
    pos_mask = (gt == 1.0).astype(jnp.float32)
    neg_mask = (gt < 1.0).astype(jnp.float32)
    pos_loss = jnp.sum(-((1.0 - pred) ** alpha) * jnp.log(pred) * pos_mask)
    neg_weight = (1.0 - gt) ** beta
    neg_loss = jnp.sum(neg_weight * (-(pred ** alpha) * jnp.log(1.0 - pred)) * neg_mask)
    return (pos_loss + neg_loss) / jnp.maximum(jnp.sum(pos_mask), 1.0)


if __name__ == "__main__":
    B, C, H, W = 2, 4, 16, 16
    key = jax.random.PRNGKey(0)
    kp, kg, km = jax.random.split(key, 3)

    pred = jax.random.uniform(kp, (B, C, H, W), jnp.float32, 1e-3, 1.0 - 1e-3)
    gt_soft = jax.random.uniform(kg, (B, C, H, W), jnp.float32, 0.0, 0.999)
    peaks = jax.random.uniform(km, (B, C, H, W), jnp.float32) > 0.98
    gt = jnp.where(peaks, jnp.float32(1.0), gt_soft)  # heatmap with exact-1 peaks

    loss = jax.block_until_ready(hm_loss(pred, gt))
    ref = hm_loss_ref(pred, gt)

    assert loss.shape == (), loss.shape
    assert jnp.isfinite(loss), loss
    assert jnp.allclose(loss, ref, rtol=1e-4, atol=1e-5), (loss, ref)
    print("KERNEL_OK")
</pallas_src>

<mosaic_0001>
module attributes {stable_mosaic.version = 11 : i64} {
  func.func @_hm_loss_kernel(%arg0: i32, %arg1: memref<16x128xf32, #tpu.memory_space<vmem>>, %arg2: memref<16x128xf32, #tpu.memory_space<vmem>>, %arg3: memref<1x1xf32, #tpu.memory_space<vmem>>, %arg4: memref<8x128xf32, #tpu.memory_space<vmem>>, %arg5: memref<8x128xf32, #tpu.memory_space<vmem>>) attributes {dimension_semantics = [#tpu.dimension_semantics<arbitrary>], iteration_bounds = array<i64: 1>, scalar_prefetch = 0 : i64, scratch_operands = 2 : i64, tpu.core_type = #tpu.core_type<tc>, window_params = [{transform_indices = @transform_0, window_bounds = array<i64: 16, 128>}, {transform_indices = @transform_1, window_bounds = array<i64: 16, 128>}, {pipeline_mode = #tpu.pipeline_mode<synchronous>, transform_indices = @transform_2, window_bounds = array<i64: 1, 1>}]} {
    %c0_i32 = arith.constant 0 : i32
    %0 = arith.cmpi eq, %arg0, %c0_i32 : i32
    %1 = arith.extui %0 : i1 to i32
    %c0_i32_0 = arith.constant 0 : i32
    %2 = arith.cmpi ne, %1, %c0_i32_0 : i32
    scf.if %2 {
      %cst_24 = arith.constant 0.000000e+00 : f32
      %49 = vector.broadcast %cst_24 : f32 to vector<8x128xf32>
      %c0_25 = arith.constant 0 : index
      %c0_26 = arith.constant 0 : index
      %50 = vector.load %arg4[%c0_25, %c0_26] : memref<8x128xf32, #tpu.memory_space<vmem>>, vector<8x128xf32>
      tpu.vector_store %arg4[%c0_25, %c0_26], %49 {strides = array<i32>} : memref<8x128xf32, #tpu.memory_space<vmem>>, vector<8x128xf32>,
      %cst_27 = arith.constant 0.000000e+00 : f32
      %51 = vector.broadcast %cst_27 : f32 to vector<8x128xf32>
      %c0_28 = arith.constant 0 : index
      %c0_29 = arith.constant 0 : index
      %52 = vector.load %arg5[%c0_28, %c0_29] : memref<8x128xf32, #tpu.memory_space<vmem>>, vector<8x128xf32>
      tpu.vector_store %arg5[%c0_28, %c0_29], %51 {strides = array<i32>} : memref<8x128xf32, #tpu.memory_space<vmem>>, vector<8x128xf32>,
    } else {
    }
    %c0 = arith.constant 0 : index
    %c0_1 = arith.constant 0 : index
    %3 = vector.load %arg1[%c0, %c0_1] : memref<16x128xf32, #tpu.memory_space<vmem>>, vector<16x128xf32>
    %cst = arith.constant 9.99999974E-5 : f32
    %cst_2 = arith.constant 0.999899983 : f32
    %4 = vector.broadcast %cst : f32 to vector<16x128xf32>
    %5 = arith.maximumf %4, %3 : vector<16x128xf32>
    %6 = vector.broadcast %cst_2 : f32 to vector<16x128xf32>
    %7 = arith.minimumf %6, %5 : vector<16x128xf32>
    %c0_3 = arith.constant 0 : index
    %c0_4 = arith.constant 0 : index
    %8 = vector.load %arg2[%c0_3, %c0_4] : memref<16x128xf32, #tpu.memory_space<vmem>>, vector<16x128xf32>
    %cst_5 = arith.constant 1.000000e+00 : f32
    %9 = vector.broadcast %cst_5 : f32 to vector<16x128xf32>
    %10 = arith.cmpf oeq, %8, %9 : vector<16x128xf32>
    %cst_6 = arith.constant 1.000000e+00 : f32
    %11 = vector.broadcast %cst_6 : f32 to vector<16x128xf32>
    %12 = arith.cmpf olt, %8, %11 : vector<16x128xf32>
    %13 = arith.extui %10 : vector<16x128xi1> to vector<16x128xi32>
    %14 = arith.sitofp %13 : vector<16x128xi32> to vector<16x128xf32>
    %15 = arith.extui %12 : vector<16x128xi1> to vector<16x128xi32>
    %16 = arith.sitofp %15 : vector<16x128xi32> to vector<16x128xf32>
    %cst_7 = arith.constant 1.000000e+00 : f32
    %17 = vector.broadcast %cst_7 : f32 to vector<16x128xf32>
    %18 = arith.subf %17, %7 : vector<16x128xf32>
    %19 = arith.select %10, %7, %18 : vector<16x128xi1>, vector<16x128xf32>
    %20 = math.log %19 : vector<16x128xf32>
    %cst_8 = arith.constant 1.000000e+00 : f32
    %21 = vector.broadcast %cst_8 : f32 to vector<16x128xf32>
    %22 = arith.subf %21, %8 : vector<16x128xf32>
    %cst_9 = arith.constant 0.000000e+00 : f32
    %23 = vector.broadcast %cst_9 : f32 to vector<16x128xf32>
    %24 = arith.select %12, %22, %23 : vector<16x128xi1>, vector<16x128xf32>
    %cst_10 = arith.constant 1.000000e+00 : f32
    %25 = vector.broadcast %cst_10 : f32 to vector<16x128xf32>
    %26 = arith.subf %25, %7 : vector<16x128xf32>
    %27 = arith.mulf %26, %26 : vector<16x128xf32>
    %28 = arith.mulf %24, %24 : vector<16x128xf32>
    %29 = arith.mulf %16, %28 : vector<16x128xf32>
    %30 = arith.mulf %7, %7 : vector<16x128xf32>
    %31 = arith.mulf %29, %30 : vector<16x128xf32>
    %32 = arith.select %10, %27, %31 : vector<16x128xi1>, vector<16x128xf32>
    %cst_11 = arith.constant 0.000000e+00 : f32
    %33 = vector.broadcast %cst_11 : f32 to vector<16x128xf32>
    %34 = arith.subf %33, %32 : vector<16x128xf32>
    %35 = arith.mulf %34, %20 : vector<16x128xf32>
    %c0_12 = arith.constant 0 : index
    %c0_13 = arith.constant 0 : index
    %36 = vector.load %arg4[%c0_12, %c0_13] : memref<8x128xf32, #tpu.memory_space<vmem>>, vector<8x128xf32>
    %37 = vector.shape_cast %35 : vector<16x128xf32> to vector<2x8x128xf32>
    %cst_14 = arith.constant dense<0.000000e+00> : vector<8x128xf32>
    %38 = vector.multi_reduction <add>, %37, %cst_14 [0] : vector<2x8x128xf32> to vector<8x128xf32>
    %39 = arith.addf %36, %38 : vector<8x128xf32>
    %c0_15 = arith.constant 0 : index
    %c0_16 = arith.constant 0 : index
    %40 = vector.load %arg4[%c0_15, %c0_16] : memref<8x128xf32, #tpu.memory_space<vmem>>, vector<8x128xf32>
    tpu.vector_store %arg4[%c0_15, %c0_16], %39 {strides = array<i32>} : memref<8x128xf32, #tpu.memory_space<vmem>>, vector<8x128xf32>,
    %c0_17 = arith.constant 0 : index
    %c0_18 = arith.constant 0 : index
    %41 = vector.load %arg5[%c0_17, %c0_18] : memref<8x128xf32, #tpu.memory_space<vmem>>, vector<8x128xf32>
    %42 = vector.shape_cast %14 : vector<16x128xf32> to vector<2x8x128xf32>
    %cst_19 = arith.constant dense<0.000000e+00> : vector<8x128xf32>
    %43 = vector.multi_reduction <add>, %42, %cst_19 [0] : vector<2x8x128xf32> to vector<8x128xf32>
    %44 = arith.addf %41, %43 : vector<8x128xf32>
    %c0_20 = arith.constant 0 : index
    %c0_21 = arith.constant 0 : index
    %45 = vector.load %arg5[%c0_20, %c0_21] : memref<8x128xf32, #tpu.memory_space<vmem>>, vector<8x128xf32>
    tpu.vector_store %arg5[%c0_20, %c0_21], %44 {strides = array<i32>} : memref<8x128xf32, #tpu.memory_space<vmem>>, vector<8x128xf32>,
    %c0_i32_22 = arith.constant 0 : i32
    %46 = arith.cmpi eq, %arg0, %c0_i32_22 : i32
    %47 = arith.extui %46 : i1 to i32
    %c0_i32_23 = arith.constant 0 : i32
    %48 = arith.cmpi ne, %47, %c0_i32_23 : i32
    scf.if %48 {
      %c0_24 = arith.constant 0 : index
      %c0_25 = arith.constant 0 : index
      %49 = vector.load %arg4[%c0_24, %c0_25] : memref<8x128xf32, #tpu.memory_space<vmem>>, vector<8x128xf32>
      %50 = vector.shape_cast %49 : vector<8x128xf32> to vector<1x8x128xf32>
      %cst_26 = arith.constant dense<0.000000e+00> : vector<1xf32>
      %51 = vector.multi_reduction <add>, %50, %cst_26 [1, 2] : vector<1x8x128xf32> to vector<1xf32>
      %52 = vector.shape_cast %51 : vector<1xf32> to vector<1x1x1xf32>
      %53 = vector.extract %52[0, 0, 0] : f32 from vector<1x1x1xf32>
      %c0_27 = arith.constant 0 : index
      %c0_28 = arith.constant 0 : index
      %54 = vector.load %arg5[%c0_27, %c0_28] : memref<8x128xf32, #tpu.memory_space<vmem>>, vector<8x128xf32>
      %55 = vector.shape_cast %54 : vector<8x128xf32> to vector<1x8x128xf32>
      %cst_29 = arith.constant dense<0.000000e+00> : vector<1xf32>
      %56 = vector.multi_reduction <add>, %55, %cst_29 [1, 2] : vector<1x8x128xf32> to vector<1xf32>
      %57 = vector.shape_cast %56 : vector<1xf32> to vector<1x1x1xf32>
      %58 = vector.extract %57[0, 0, 0] : f32 from vector<1x1x1xf32>
      %cst_30 = arith.constant 1.000000e+00 : f32
      %59 = arith.maximumf %58, %cst_30 : f32
      %60 = arith.divf %53, %59 : f32
      %61 = vector.broadcast %60 : f32 to vector<1x1xf32>
      %c0_31 = arith.constant 0 : index
      %c0_32 = arith.constant 0 : index
      %62 = vector.load %arg3[%c0_31, %c0_32] : memref<1x1xf32, #tpu.memory_space<vmem>>, vector<1x1xf32>
      tpu.vector_store %arg3[%c0_31, %c0_32], %61 {strides = array<i32>} : memref<1x1xf32, #tpu.memory_space<vmem>>, vector<1x1xf32>,
    } else {
    }
    return
  }
  func.func @transform_0(%arg0: i32) -> (i32, i32) {
    %c0_i32 = arith.constant 0 : i32
    %c0_i32_0 = arith.constant 0 : i32
    return %arg0, %c0_i32 : i32, i32
  }
  func.func @transform_1(%arg0: i32) -> (i32, i32) {
    %c0_i32 = arith.constant 0 : i32
    %c0_i32_0 = arith.constant 0 : i32
    return %arg0, %c0_i32 : i32, i32
  }
  func.func @transform_2(%arg0: i32) -> (i32, i32) {
    %c0_i32 = arith.constant 0 : i32
    %c0_i32_0 = arith.constant 0 : i32
    %c0_i32_1 = arith.constant 0 : i32
    return %c0_i32, %c0_i32_0 : i32, i32
  }
}

</mosaic_0001>

<bundles_post_ra>
// kernel: tpu_custom_call.1
= control target key start
LH: loop header
LB: loop body
LE: loop exit
PB: predicated region body
PF: predicated region fallthrough
CT: control target
= control target key end

     0   :  { %7 = vsyncpa [#allocation5], 0  ;;  %s275_s0 = inlined_call_operand.hbm [shape: f32[16,128], index: 0, kind: input, shape index: {}]   ;;  %s276_s1 = inlined_call_operand.hbm [shape: f32[16,128], index: 1, kind: input, shape index: {}]   ;;  %s277_s2 = inlined_call_operand.hbm [shape: f32[1,1], index: 2, kind: output, shape index: {}]  }
   0x1   :  { %8 = vsyncpa [#allocation8], 0 }
   0x2   :  { %9 = vsyncpa [#allocation6], 0  ;;  %s238_s9 = smov [#allocation4]  }
   0x3   :  { %s15_s10 = sshll.u32 %s238_s9, 4  ;;  %s16_s10 = int_to_ptr.vmem [resolvable:$true] %s15_s10 }
   0x4   :  { %s180_s11 = scalar_lea.vmem %s16_s10, 256  ;;  %p185_p1 = scmp.lt.s32.totalorder %s16_s10, %s16_s10 }
   0x5   :  { %p181_p0 = scmp.ne.s32.totalorder %s16_s10, %s180_s11  ;;  %p186_p2 = scmp.lt.s32.totalorder %s180_s11, %s180_s11 }
   0x7   :  { %p187_p3 = por %p186_p2, %p185_p1 }
   0x9   :  { %p188_p4 = pnand %p187_p3, %p181_p0 }
   0xb   :  { %191 = shalt.err (!%p188_p4)
}
   0xc   :  { %s239_s12 = smov 128   ;;  %s240_s13 = smov 8  }
   0xd   :  { %21 = dma.hbm_to_vmem [thread:$0]  %s275_s0, 256, %s16_s10, [#allocation5], %s239_s12, %s239_s12, %s240_s13  }
   0xe   :  { %s241_s16 = smov [#allocation7]  }
   0xf   :  { %s27_s17 = sshll.u32 %s241_s16, 4  ;;  %s28_s17 = int_to_ptr.vmem [resolvable:$true] %s27_s17 }
  0x10   :  { %s200_s18 = scalar_lea.vmem %s28_s17, 256  ;;  %p205_p6 = scmp.lt.s32.totalorder %s28_s17, %s28_s17 }
  0x11   :  { %p201_p5 = scmp.ne.s32.totalorder %s28_s17, %s200_s18  ;;  %p206_p7 = scmp.lt.s32.totalorder %s200_s18, %s200_s18 }
  0x13   :  { %p207_p8 = por %p206_p7, %p205_p6 }
  0x15   :  { %p208_p9 = pnand %p207_p8, %p201_p5 }
  0x17   :  { %211 = shalt.err (!%p208_p9)
}
  0x18   :  { %33 = dma.hbm_to_vmem [thread:$0]  %s276_s1, 256, %s28_s17, [#allocation8], %s239_s12, %s239_s12, %s240_s13  }
  0x19   :  { %232 = dma.done.wait [#allocation5], 256  }
  0x1a   :  { %233 = vsyncadd [#allocation5], 4294967040 }
  0x1b   :  { %234 = dma.done.wait [#allocation8], 256  }
  0x1c   :  { %235 = vsyncadd [#allocation8], 4294967040  ;;  %v46_v0 = vld [vmem:[#allocation4] sm:$0xff]  ;;  %v47_v1 = vld [vmem:[#allocation4 + $0x8] sm:$0xff]  ;;  %v242_v14 = vmov 0.0   ;;  %s243_s21 = smov 1.0  }
  0x1d   :  { %v48_v2 = vmax.f32 %v46_v0, 0.0001  ;;  %v49_v3 = vmax.f32 %v47_v1, 0.0001  ;;  %v52_v4 = vld [vmem:[#allocation7] sm:$0xff]  ;;  %v53_v5 = vld [vmem:[#allocation7 + $0x8] sm:$0xff] }
  0x1e   :  { %vm56_vm0 = vcmp.lt.f32.partialorder %v52_v4, 1.0  ;;  %v74_v6 = vsub.f32 1.0, %v52_v4  ;;  %vm57_vm1 = vcmp.lt.f32.partialorder %v53_v5, 1.0  ;;  %vm54_vm2 = vcmp.eq.f32.partialorder %v52_v4, 1.0  ;;  %s244_s23 = smov [#allocation9]  }
  0x1f   :  { %v50_v7 = vmin.f32 %v48_v2, 0.9999  ;;  %v51_v8 = vmin.f32 %v49_v3, 0.9999  ;;  %vm55_vm3 = vcmp.eq.f32.partialorder %v53_v5, 1.0  ;;  %v75_v9 = vsub.f32 1.0, %v53_v5 }
  0x20   :  { %v76_v10 = vsel %vm56_vm0, %v74_v6, 0.0  ;;  %v151_v15 = vsel %vm56_vm0, 1.0, %v242_v14  ;;  %v152_v17 = vsel %vm57_vm1, 1.0, %v242_v14  ;;  %v149_v39 = vsel %vm54_vm2, 1.0, %v242_v14  ;;  %s139_s24 = sshll.u32 %s244_s23, 4  ;;  %s140_s24 = int_to_ptr.vmem [resolvable:$true] %s139_s24 }
  0x21   :  { %v66_v11 = vsub.f32 1.0, %v50_v7  ;;  %v67_v12 = vsub.f32 1.0, %v51_v8  ;;  %v80_v13 = vmul.f32 %v76_v10, %v76_v10  ;;  %v77_v16 = vsel %vm57_vm1, %v75_v9, 0.0  ;;  %s212_s27 = scalar_lea.vmem %s140_s24, 16  ;;  %s216_s28 = scalar_lea.vmem %s140_s24, 32 }
  0x22   :  { %v81_v20 = vmul.f32 %v77_v16, %v77_v16  ;;  %v84_v22 = vmul.f32 %v50_v7, %v50_v7  ;;  %v85_v24 = vmul.f32 %v51_v8, %v51_v8  ;;  %v150_v40 = vsel %vm55_vm3, 1.0, %v242_v14  ;;  %p213_p10 = scmp.ne.s32.totalorder %s140_s24, %s212_s27  ;;  %p217_p11 = scmp.lt.s32.totalorder %s140_s24, %s140_s24 }
  0x23   :  { %v68_v18 = vsel %vm54_vm2, %v50_v7, %v66_v11  ;;  %v69_v19 = vsel %vm55_vm3, %v51_v8, %v67_v12  ;;  %v82_v21 = vmul.f32 %v151_v15, %v80_v13  ;;  %v78_v25 = vmul.f32 %v66_v11, %v66_v11  ;;  %p218_p12 = scmp.lt.s32.totalorder %s216_s28, %s212_s27 }
  0x24   :  { %166 = vlog2.f32 %v68_v18  ;;  %v83_v23 = vmul.f32 %v152_v17, %v81_v20  ;;  %v79_v27 = vmul.f32 %v67_v12, %v67_v12  ;;  %v99_v42 = vadd.f32 %v150_v40, %v149_v39 }
  0x25   :  { %168 = vlog2.f32 %v69_v19  ;;  %v86_v26 = vmul.f32 %v84_v22, %v82_v21  ;;  %vm131_vm4 = vcmask 0   ;;  %p219_p13 = por %p218_p12, %p217_p11 }
  0x26   :  { %v87_v28 = vmul.f32 %v85_v24, %v83_v23 }
  0x27   :  { %v88_v29 = vsel %vm54_vm2, %v78_v25, %v86_v26  ;;  %p220_p0 = pnand %p219_p13, %p213_p10 }
  0x28   :  { %v89_v30 = vsel %vm55_vm3, %v79_v27, %v87_v28  ;;  %v90_v31 = vsub.f32 0.0, %v88_v29 }
  0x29   :  { %v91_v33 = vsub.f32 0.0, %v89_v30 }
  0x31   :  { %v167_v32 = vpop.eup %166 }
  0x32   :  { %v169_v34 = vpop.eup %168  ;;  %v71_v35 = vmul.f32 0.6931472, %v167_v32 }
  0x33   :  { %v73_v36 = vmul.f32 0.6931472, %v169_v34 }
  0x34   :  { %v92_v37 = vmul.f32 %v90_v31, %v71_v35 }
  0x35   :  { %v93_v38 = vmul.f32 %v91_v33, %v73_v36 }
  0x37   :  { %v95_v41 = vadd.f32 %v93_v38, %v92_v37 }
  0x39   :  { %106 = vadd.xlane.f32.xlu0 %v95_v41 }
  0x3d   :  { %116 = vadd.xlane.f32.xlu0 %v99_v42 }
  0xc2   :  { %v107_v43 = vpop.xlane.xlu0 %106 }
  0xc3   :  { %v108_v44 = vrot.slane %v107_v43, 4 }
  0xc5   :  { %v109_v45 = vadd.f32 %v108_v44, %v107_v43 }
  0xc6   :  { %v117_v46 = vpop.xlane.xlu0 %116 }
  0xc7   :  { %v110_v47 = vrot.slane %v109_v45, 2  ;;  %v118_v48 = vrot.slane %v117_v46, 4 }
  0xc9   :  { %v119_v49 = vadd.f32 %v118_v48, %v117_v46  ;;  %v111_v50 = vadd.f32 %v110_v47, %v109_v45 }
  0xcb   :  { %v120_v51 = vrot.slane %v119_v49, 2  ;;  %v112_v52 = vrot.slane %v111_v50, 1 }
  0xcd   :  { %v121_v53 = vadd.f32 %v120_v51, %v119_v49  ;;  %v113_v54 = vadd.f32 %v112_v52, %v111_v50 }
  0xcf   :  { %153 = vpush %v113_v54  ;;  %v122_v55 = vrot.slane %v121_v53, 1 }
  0xd1   :  { %v123_v56 = vadd.f32 %v122_v55, %v121_v53 }
  0xd3   :  { %155 = vpush %v123_v56 }
 0x100   :  { %s154_s0 = spop %153 }
 0x104   :  { %s156_s1 = spop %155 }
 0x105   :  { %s125_s22 = smax.f32 %s243_s21, %s156_s1 }
 0x106   :  { %v126_v57 = vstv %s125_s22 }
 0x107   :  { %170 = vrcp.f32 %v126_v57 }
 0x114   :  { %v171_v58 = vpop.eup %170 }
 0x115   :  { %157 = vpush %v171_v58 }
 0x146   :  { %s158_s25 = spop %157 }
 0x147   :  { %s129_s26 = smul.f32 %s158_s25, %s154_s0 }
 0x149   :  { %v130_v59 = vstv %s129_s26 }
 0x14a   :  { %132 = vst.msk [vmem:[#allocation9] sm:$0x1] %vm131_vm4, %v130_v59 }
 0x14b   :  { %223 = shalt.err (!%p220_p0)
}
 0x14c   :  { %142 = dma.vmem_to_hbm [thread:$0]  %s140_s24, 16, %s277_s2, [#allocation6]  }
 0x14d   :  { %236 = dma.done.wait [#allocation6], 16  }
 0x14e   :  { %237 = vsyncadd [#allocation6], 4294967280 }
 0x14f   :  { %146 = vsyncpa [#allocation5], 1 }
 0x150   :  { %147 = vsyncpa [#allocation8], 1 }
 0x151   :  { %148 = vsyncpa [#allocation6], 1 }

</bundles_post_ra>
